<compile_context>
chip_gen: v7x
topology: tpu7x:2x2x1
jax: 0.10.0
libtpu: 0.0.40
codegen_flags: <defaults>
</compile_context>

<pallas_src>
import functools

import jax
import jax.numpy as jnp
import numpy as np
from jax import lax
from jax.experimental import pallas as pl
from jax.experimental.pallas import tpu as pltpu


def _relu6(x):
    return jnp.clip(x, 0.0, 6.0)


@functools.lru_cache(maxsize=None)
def _pltpu_roll_is_numpy_convention() -> bool:
    """One-time probe of pltpu.roll's rotation direction (portability guard).

    Returns True if pltpu.roll matches np.roll (elements move toward higher
    indices for positive shift). Negligible cost; run once per process.
    """
    def k(x_ref, o_ref):
        o_ref[...] = pltpu.roll(x_ref[...], 1, axis=1)

    x = jnp.tile(jnp.arange(128, dtype=jnp.float32)[None, :], (8, 1))
    y = pl.pallas_call(
        k, out_shape=jax.ShapeDtypeStruct((8, 128), jnp.float32))(x)
    return bool(y[0, 1] == 0.0)


# --------------------------------------------------------------------------- #
# Pallas kernel: whole batch processed in one invocation (no grid).            #
#                                                                              #
# cvec column layout (packed per-channel vectors, f32, shape (Ch, 7+K*K+3*hid))#
#   0: expand BN scale    1: expand BN bias                                    #
#   2: depthw BN scale    3: depthw BN bias                                    #
#   4 .. 3+K*K                 : depthwise taps (row-major kh*K+kw)            #
#   4+K*K .. 3+K*K+hid         : SE reduce weight sw1^T columns (Ch, hid)      #
#   4+K*K+hid .. 3+K*K+2*hid   : SE expand weight sw2 columns   (Ch, hid)      #
#   4+K*K+2*hid                : SE expand bias b2 (Ch)                        #
#   5+K*K+2*hid .. 4+K*K+3*hid : SE reduce bias b1 (stored in ROW 0 only)      #
#   5+K*K+3*hid                : project BN scale (rows 0..Cout-1)             #
#   6+K*K+3*hid                : project BN bias  (rows 0..Cout-1)             #
# --------------------------------------------------------------------------- #
def _fused_block_kernel(x_ref, wet_ref, wpt_ref, cvec_ref, out_ref,
                        h_ref, dg_ref, *, N, H, W, ksize, hid, use_res,
                        roll_fwd):
    Cin, L = x_ref.shape
    Ch = wet_ref.shape[0]
    Cout = wpt_ref.shape[0]
    HW = H * W
    kk = ksize * ksize
    pad = (ksize - 1) // 2

    col_dw = 4
    col_sw1 = col_dw + kk
    col_sw2 = col_sw1 + hid
    col_b2 = col_sw2 + hid
    col_b1 = col_b2 + 1
    col_ps = col_b1 + hid
    col_pb = col_ps + 1

    cv = cvec_ref[...]                                       # (Ch, ncol) f32, 6 vregs

    # ---- expand: ONE 1x1 conv over all pixels (bf16 MXU, f32 acc) + BN + ReLU6
    x_bf = x_ref[...].astype(jnp.bfloat16)                   # (Cin, L)
    h = jnp.dot(wet_ref[...], x_bf,
                preferred_element_type=jnp.float32)          # (Ch, L) f32
    h = _relu6(h * cv[:, 0:1] + cv[:, 1:2])
    h_ref[...] = h                                           # park in VMEM scratch

    # masks for SAME zero padding, identical for every image chunk (hoisted)
    lane = lax.broadcasted_iota(jnp.int32, (1, HW), 1)
    wcol = lane % W
    hrow = lane // W

    d_scale = cv[:, 2:3]
    d_bias = cv[:, 3:4]
    sw1t = cv[:, col_sw1:col_sw1 + hid]                      # (Ch, hid)
    sw2 = cv[:, col_sw2:col_sw2 + hid]                       # (Ch, hid)
    b1row = cv[0:1, col_b1:col_b1 + hid]                     # (1, hid)
    b2col = cv[:, col_b2:col_b2 + 1]                         # (Ch, 1)
    inv_hw = 1.0 / float(HW)

    # ---- per image: depthwise KxK (roll+mask) -> SE gate -> bf16 scratch -----
    for n in range(N):
        hn = h_ref[:, n * HW:(n + 1) * HW]                   # (Ch, HW) f32, 12 vregs
        acc = None
        for kh in range(ksize):
            for kw in range(ksize):
                dh, dw = kh - pad, kw - pad
                d_flat = dh * W + dw                         # pixel displacement
                if d_flat == 0:
                    shifted = hn
                else:
                    # want shifted[:, l] = hn[:, l + d_flat]
                    shift = (-d_flat) % HW if roll_fwd else d_flat % HW
                    shifted = pltpu.roll(hn, shift, axis=1)
                conds = []
                if dh > 0:
                    conds.append(hrow < H - dh)
                elif dh < 0:
                    conds.append(hrow >= -dh)
                if dw > 0:
                    conds.append(wcol < W - dw)
                elif dw < 0:
                    conds.append(wcol >= -dw)
                if conds:
                    m = conds[0]
                    for c in conds[1:]:
                        m = jnp.logical_and(m, c)
                    shifted = jnp.where(m, shifted, 0.0)     # zero padding
                tap = cv[:, col_dw + kh * ksize + kw:
                         col_dw + kh * ksize + kw + 1]       # (Ch, 1)
                contrib = shifted * tap
                acc = contrib if acc is None else acc + contrib
        d = _relu6(acc * d_scale + d_bias)                   # (Ch, HW) f32

        # SE (vectorized, f32): pooled -> hidden -> gate
        pooled = jnp.sum(d, axis=1, keepdims=True) * inv_hw  # (Ch, 1)
        a = jnp.sum(sw1t * pooled, axis=0, keepdims=True)    # (1, hid)
        a = _relu6(a + b1row)
        s2 = jnp.sum(sw2 * a, axis=1, keepdims=True)         # (Ch, 1)
        gate = jax.nn.sigmoid(s2 + b2col)
        dg_ref[:, n * HW:(n + 1) * HW] = (d * gate).astype(dg_ref.dtype)

    # ---- project: ONE 1x1 conv over all pixels (bf16 MXU) + BN (+ residual) --
    p = jnp.dot(wpt_ref[...], dg_ref[...],
                preferred_element_type=jnp.float32)          # (Cout, L) f32
    p = p * cv[0:Cout, col_ps:col_ps + 1] + cv[0:Cout, col_pb:col_pb + 1]
    if use_res:
        p = p + x_ref[...]                                   # Cin == Cout
    out_ref[...] = p.astype(out_ref.dtype)                   # 512-lane-dense store


def inverted_residual_fused(x_nchw, kp, *, ksize, use_res):
    """NCHW in / NCHW out (PyTorch convention).

    The kernel works in a channels-on-sublanes / pixels-on-lanes layout
    (C, N*H*W); the wrapper does one tiny XLA transpose each way so the kernel
    sees a single dense lane axis of N*H*W pixels.
    """
    N, Cin, H, W = x_nchw.shape
    Ch = kp['we_t'].shape[0]
    Cout = kp['wp_t'].shape[0]
    hid = kp['hid']
    L = N * H * W

    x_cl = jnp.transpose(x_nchw.reshape(N, Cin, H * W), (1, 0, 2)).reshape(Cin, L)

    kernel = functools.partial(
        _fused_block_kernel, N=N, H=H, W=W, ksize=ksize, hid=hid,
        use_res=use_res, roll_fwd=_pltpu_roll_is_numpy_convention())
    # Single invocation (no grid): whole working set (<1 MiB) lives in VMEM.
    out = pl.pallas_call(
        kernel,
        out_shape=jax.ShapeDtypeStruct((Cout, L), x_nchw.dtype),
        scratch_shapes=[pltpu.VMEM((Ch, L), jnp.float32),    # expand output h
                        pltpu.VMEM((Ch, L), jnp.bfloat16)],  # SE-gated depthwise
    )(x_cl, kp['we_t'], kp['wp_t'], kp['cvec'])
    return jnp.transpose(out.reshape(Cout, N, H * W),
                         (1, 0, 2)).reshape(N, Cout, H, W)


# --------------------------------------------------------------------------- #
# Deterministic parameter construction (PyTorch layouts + packed kernel params)#
# --------------------------------------------------------------------------- #
def make_params(key, inp, oup, channels, kernel_sizes, se_ratio, eps):
    assert len(channels) == 1, "given forward is only runnable for one branch"
    Ch = sum(channels)
    K = kernel_sizes[0]
    hid = int(round(inp * se_ratio))
    ks = jax.random.split(key, 12)

    def conv_w(k, shape, scale=0.2):
        return scale * jax.random.normal(k, shape, jnp.float32)

    def bn_p(k, c):
        k1, k2, k3, k4 = jax.random.split(k, 4)
        return (jax.random.uniform(k1, (c,), jnp.float32, 0.5, 1.5),
                0.1 * jax.random.normal(k2, (c,), jnp.float32),
                0.1 * jax.random.normal(k3, (c,), jnp.float32),
                jax.random.uniform(k4, (c,), jnp.float32, 0.5, 1.5))

    tp = {}
    tp['w_expand'] = conv_w(ks[0], (Ch, inp, 1, 1))                # OIHW
    tp['e_gamma'], tp['e_beta'], tp['e_mean'], tp['e_var'] = bn_p(ks[1], Ch)
    tp['w_depth'] = conv_w(ks[2], (Ch, 1, K, K))                   # depthwise OIHW
    tp['d_gamma'], tp['d_beta'], tp['d_mean'], tp['d_var'] = bn_p(ks[3], Ch)
    tp['se_w1'] = conv_w(ks[4], (hid, Ch, 1, 1))
    tp['se_b1'] = 0.1 * jax.random.normal(ks[5], (hid,), jnp.float32)
    tp['se_w2'] = conv_w(ks[6], (Ch, hid, 1, 1))
    tp['se_b2'] = 0.1 * jax.random.normal(ks[7], (Ch,), jnp.float32)
    tp['w_project'] = conv_w(ks[8], (oup, Ch, 1, 1))
    tp['p_gamma'], tp['p_beta'], tp['p_mean'], tp['p_var'] = bn_p(ks[9], oup)

    def fold(g, b, m, v):
        s = g / jnp.sqrt(v + eps)
        return s, b - m * s

    e_s, e_b = fold(tp['e_gamma'], tp['e_beta'], tp['e_mean'], tp['e_var'])
    d_s, d_b = fold(tp['d_gamma'], tp['d_beta'], tp['d_mean'], tp['d_var'])
    p_s, p_b = fold(tp['p_gamma'], tp['p_beta'], tp['p_mean'], tp['p_var'])

    def pad_ch(v):
        return jnp.zeros((Ch,), jnp.float32).at[:v.shape[0]].set(v)

    wd = tp['w_depth'].reshape(Ch, K * K)                          # (Ch, K*K)
    sw1t = tp['se_w1'].reshape(hid, Ch).T                          # (Ch, hid)
    sw2 = tp['se_w2'].reshape(Ch, hid)                             # (Ch, hid)

    cols = [e_s, e_b, d_s, d_b]
    cols += [wd[:, k] for k in range(K * K)]
    cols += [sw1t[:, j] for j in range(hid)]
    cols += [sw2[:, j] for j in range(hid)]
    cols += [tp['se_b2']]
    # SE reduce bias b1: one column per hidden unit, value lives in ROW 0 only.
    cols += [jnp.zeros((Ch,), jnp.float32).at[0].set(tp['se_b1'][j])
             for j in range(hid)]
    cols += [pad_ch(p_s), pad_ch(p_b)]

    kp = {
        'we_t': tp['w_expand'].reshape(Ch, inp).astype(jnp.bfloat16),   # (Ch, Cin)
        'wp_t': tp['w_project'].reshape(oup, Ch).astype(jnp.bfloat16),  # (Cout, Ch)
        'cvec': jnp.stack(cols, axis=1),                                # (Ch, 7+K*K+3*hid)
        'hid': hid,
    }
    return tp, kp


# --------------------------------------------------------------------------- #
# Pure-JAX reference (NCHW, mirrors PyTorch eval-mode forward).                #
# The two 1x1 convs use bf16 operands / f32 accumulation, matching the         #
# kernel's single-pass bf16 MXU matmuls; everything else is f32.               #
# --------------------------------------------------------------------------- #
def _bn_nchw(x, g, b, m, v, eps):
    inv = (g / jnp.sqrt(v + eps))[None, :, None, None]
    return (x - m[None, :, None, None]) * inv + b[None, :, None, None]


def ref_forward_nchw(x, tp, eps, use_res):
    dn = ('NCHW', 'OIHW', 'NCHW')
    HI = lax.Precision.HIGHEST
    bf = jnp.bfloat16
    hi = lax.conv_general_dilated(x.astype(bf), tp['w_expand'].astype(bf), (1, 1),
                                  'VALID', dimension_numbers=dn, precision=HI,
                                  preferred_element_type=jnp.float32)
    hi = _relu6(_bn_nchw(hi, tp['e_gamma'], tp['e_beta'], tp['e_mean'], tp['e_var'], eps))
    Ch = hi.shape[1]
    K = tp['w_depth'].shape[-1]
    pad = (K - 1) // 2
    d = lax.conv_general_dilated(hi, tp['w_depth'], (1, 1), [(pad, pad), (pad, pad)],
                                 dimension_numbers=dn, feature_group_count=Ch,
                                 precision=HI)
    d = _relu6(_bn_nchw(d, tp['d_gamma'], tp['d_beta'], tp['d_mean'], tp['d_var'], eps))
    se = jnp.mean(d, axis=(2, 3), keepdims=True)
    se = lax.conv_general_dilated(se, tp['se_w1'], (1, 1), 'VALID', dimension_numbers=dn,
                                  precision=HI) + tp['se_b1'][None, :, None, None]
    se = _relu6(se)
    se = lax.conv_general_dilated(se, tp['se_w2'], (1, 1), 'VALID', dimension_numbers=dn,
                                  precision=HI) + tp['se_b2'][None, :, None, None]
    d = jax.nn.sigmoid(se) * d
    p = lax.conv_general_dilated(d.astype(bf), tp['w_project'].astype(bf), (1, 1),
                                 'VALID', dimension_numbers=dn, precision=HI,
                                 preferred_element_type=jnp.float32)
    p = _bn_nchw(p, tp['p_gamma'], tp['p_beta'], tp['p_mean'], tp['p_var'], eps)
    return x + p if use_res else p


if __name__ == "__main__":
    key = jax.random.PRNGKey(0)
    k_param, k_x = jax.random.split(key)

    # Module config (small, consistent with __init__ constraints).
    N, inp, oup, H, W = 2, 16, 16, 16, 16
    stride = 1
    channels = [48]
    kernel_sizes = [3]
    se_ratio = 0.25
    eps = 1e-5
    use_res = (stride == 1 and inp == oup)

    tp, kp = make_params(k_param, inp, oup, channels, kernel_sizes, se_ratio, eps)
    x = jax.random.normal(k_x, (N, inp, H, W), jnp.float32)        # NCHW like PyTorch

    y = inverted_residual_fused(x, kp, ksize=kernel_sizes[0], use_res=use_res)
    y = jax.block_until_ready(y)

    y_ref = jax.block_until_ready(ref_forward_nchw(x, tp, eps, use_res))
    # Both sides use bf16 MXU operands for the 1x1 convs; remaining differences
    # are accumulation order / transcendental impl, far below 1e-2.
    np.testing.assert_allclose(np.asarray(y), np.asarray(y_ref), rtol=1e-2, atol=1e-2)
    print("KERNEL_OK")
</pallas_src>

<mosaic_0001>
module attributes {stable_mosaic.version = 11 : i64} {
  func.func @k(%arg0: memref<8x128xf32, #tpu.memory_space<vmem>>, %arg1: memref<8x128xf32, #tpu.memory_space<vmem>>) attributes {dimension_semantics = [], scalar_prefetch = 0 : i64, scratch_operands = 0 : i64, tpu.core_type = #tpu.core_type<tc>} {
    %c0 = arith.constant 0 : index
    %c0_0 = arith.constant 0 : index
    %0 = vector.load %arg0[%c0, %c0_0] : memref<8x128xf32, #tpu.memory_space<vmem>>, vector<8x128xf32>
    %c1_i32 = arith.constant 1 : i32
    %1 = tpu.dynamic_rotate %0 by %c1_i32 dim 1 : vector<8x128xf32>, i32 -> vector<8x128xf32>
    %c0_1 = arith.constant 0 : index
    %c0_2 = arith.constant 0 : index
    %2 = vector.load %arg1[%c0_1, %c0_2] : memref<8x128xf32, #tpu.memory_space<vmem>>, vector<8x128xf32>
    tpu.vector_store %arg1[%c0_1, %c0_2], %1 {strides = array<i32>} : memref<8x128xf32, #tpu.memory_space<vmem>>, vector<8x128xf32>,
    return
  }
}

</mosaic_0001>

<bundles_post_ra>
// kernel: tpu_custom_call.1
= control target key start
LH: loop header
LB: loop body
LE: loop exit
PB: predicated region body
PF: predicated region fallthrough
CT: control target
= control target key end

     0   :  { %6 = vsyncpa [#allocation3], 0  ;;  %s128_s0 = inlined_call_operand.hbm [shape: f32[8,128], index: 0, kind: input, shape index: {}]   ;;  %s129_s1 = inlined_call_operand.hbm [shape: f32[8,128], index: 1, kind: output, shape index: {}]  }
   0x1   :  { %7 = vsyncpa [#allocation4], 0  ;;  %s91_s6 = smov [#allocation2]   ;;  %s43_s10 = scalar_lea.hbm %s128_s0, 128 }
   0x2   :  { %s14_s7 = sshll.u32 %s91_s6, 4  ;;  %p44_p0 = scmp.ne.s32.totalorder %s128_s0, %s43_s10  ;;  %s15_s7 = int_to_ptr.vmem [resolvable:$true] %s14_s7 }
   0x3   :  { %p47_p1 = scmp.lt.u32.totalorder %s43_s10, %s128_s0 }
   0x5   :  { %p49_p2 = pnand %p47_p1, %p44_p0 }
   0x7   :  { %52 = shalt.err (!%p49_p2)
}
   0x8   :  { %s53_s15 = scalar_lea.vmem %s15_s7, 128  ;;  %p58_p4 = scmp.lt.s32.totalorder %s15_s7, %s15_s7 }
   0x9   :  { %p54_p3 = scmp.ne.s32.totalorder %s15_s7, %s53_s15  ;;  %p59_p5 = scmp.lt.s32.totalorder %s53_s15, %s53_s15 }
   0xb   :  { %p60_p6 = por %p59_p5, %p58_p4 }
   0xd   :  { %p61_p7 = pnand %p60_p6, %p54_p3 }
   0xf   :  { %64 = shalt.err (!%p61_p7)
}
  0x10   :  { %17 = dma.hbm_to_vmem [thread:$0]  %s128_s0, 128, %s15_s7, [#allocation3]  }
  0x11   :  { %87 = dma.done.wait [#allocation3], 128  }
  0x12   :  { %88 = vsyncadd [#allocation3], 4294967168  ;;  %v21_v0 = vld [vmem:[#allocation2] sm:$0xff]  ;;  %s92_s18 = smov 1   ;;  %s93_s19 = smov [#allocation5]  }
  0x13   :  { %22 = vrot.lane.b32.xlu0 %v21_v0, %s92_s18  ;;  %s31_s20 = sshll.u32 %s93_s19, 4  ;;  %s32_s20 = int_to_ptr.vmem [resolvable:$true] %s31_s20 }
  0x14   :  { %s65_s21 = scalar_lea.vmem %s32_s20, 128  ;;  %p70_p9 = scmp.lt.s32.totalorder %s32_s20, %s32_s20 }
  0x15   :  { %p66_p8 = scmp.ne.s32.totalorder %s32_s20, %s65_s21  ;;  %p71_p10 = scmp.lt.s32.totalorder %s65_s21, %s65_s21 }
  0x17   :  { %p72_p11 = por %p71_p10, %p70_p9 }
  0x19   :  { %p73_p12 = pnand %p72_p11, %p66_p8 }
  0x85   :  { %v23_v1 = vpop.permute.xlu0 %22 }
  0x86   :  { %24 = vst [vmem:[#allocation5] sm:$0xff] %v23_v1 }
  0x87   :  { %76 = shalt.err (!%p73_p12)
}
  0x88   :  { %s77_s0 = scalar_lea.hbm %s129_s1, 128 }
  0x89   :  { %p78_p13 = scmp.ne.s32.totalorder %s129_s1, %s77_s0  ;;  %p81_p0 = scmp.lt.u32.totalorder %s77_s0, %s129_s1 }
  0x8b   :  { %p83_p1 = pnand %p81_p0, %p78_p13 }
  0x8d   :  { %86 = shalt.err (!%p83_p1)
}
  0x8e   :  { %34 = dma.vmem_to_hbm [thread:$0]  %s32_s20, 128, %s129_s1, [#allocation4]  }
  0x8f   :  { %89 = dma.done.wait [#allocation4], 128  }
  0x90   :  { %90 = vsyncadd [#allocation4], 4294967168 }
  0x91   :  { %38 = vsyncpa [#allocation3], 1 }
  0x92   :  { %39 = vsyncpa [#allocation4], 1 }

</bundles_post_ra>
